<compile_context>
chip_gen: v7x
topology: tpu7x:2x2x1
jax: 0.10.0
libtpu: 0.0.40
codegen_flags: <defaults>
</compile_context>

<pallas_src>
import functools

import jax
import jax.numpy as jnp
from jax.experimental import pallas as pl
from jax.experimental.pallas import tpu as pltpu


def _round_up(n, m):
    return (n + m - 1) // m * m


def _mlp_kernel(x_ref, w1_ref, b1_ref, w2_ref, b2_ref, w3_ref, b3_ref, o_ref):
    # One batch tile per grid step. Weights/biases are VMEM-resident across the
    # whole grid (constant index_map); x/out tiles are double-buffered by Pallas.
    x = x_ref[...]  # f32 [tile_b, in_size]

    h1 = jnp.dot(x, w1_ref[...], preferred_element_type=jnp.float32) + b1_ref[...]
    h1 = jnp.maximum(h1, 0.0)

    h2 = jnp.dot(h1, w2_ref[...], preferred_element_type=jnp.float32) + b2_ref[...]
    h2 = jnp.maximum(h2, 0.0)

    out = jnp.dot(h2, w3_ref[...], preferred_element_type=jnp.float32) + b3_ref[...]
    o_ref[...] = out.astype(o_ref.dtype)


def init_params(key, input_size, hidden_size1, hidden_size2, output_size,
                dtype=jnp.float32):
    """Deterministic init matching nn.Linear's U(-1/sqrt(fan_in), 1/sqrt(fan_in)).

    Weights are stored [in, out] (transposed vs. PyTorch) so the kernel computes
    x @ W + b directly; biases are [1, out].
    """
    keys = jax.random.split(key, 6)

    def linear_params(kw, kb, fan_in, fan_out):
        bound = 1.0 / jnp.sqrt(jnp.asarray(fan_in, dtype))
        w = jax.random.uniform(kw, (fan_in, fan_out), dtype, -bound, bound)
        b = jax.random.uniform(kb, (1, fan_out), dtype, -bound, bound)
        return w, b

    w1, b1 = linear_params(keys[0], keys[1], input_size, hidden_size1)
    w2, b2 = linear_params(keys[2], keys[3], hidden_size1, hidden_size2)
    w3, b3 = linear_params(keys[4], keys[5], hidden_size2, output_size)
    return w1, b1, w2, b2, w3, b3


@functools.partial(jax.jit, static_argnames=("tile_b",))
def linear_qnet_forward(x, params, tile_b=None):
    """Fused MLP forward. x: [batch, input_size] f32 -> [batch, output_size] f32."""
    w1, b1, w2, b2, w3, b3 = params
    batch, in_size = x.shape
    h1_size = w1.shape[1]
    h2_size = w2.shape[1]
    out_size = w3.shape[1]

    b16 = _round_up(batch, 16)
    if tile_b is None:
        tile_b = min(2048, b16)
        # If the whole (rounded) batch fits in a single tile but is large enough
        # to split, halve it so the "parallel" grid has >= 2 steps and both v7x
        # TensorCores get a batch shard (no effect on v5e/v6e, 1 TC).
        if b16 >= 32 and tile_b >= b16:
            tile_b = _round_up((b16 + 1) // 2, 16)
    else:
        if tile_b <= 0 or tile_b % 16 != 0:
            raise ValueError("tile_b must be a positive multiple of 16")
        # Rough VMEM footprint: double-buffered x/out tiles + f32 intermediates.
        # Guard against blowing v5e's 16 MiB scoped-VMEM default.
        est_bytes = tile_b * 4 * (2 * in_size + 2 * out_size + h1_size + h2_size)
        if est_bytes > 12 * 1024 * 1024:
            raise ValueError(
                f"tile_b={tile_b} needs ~{est_bytes>>20} MiB VMEM; reduce it")

    b_pad = _round_up(b16, tile_b)
    xp = x if b_pad == batch else jnp.pad(x, ((0, b_pad - batch), (0, 0)))

    grid = (b_pad // tile_b,)
    resident = lambda shape: pl.BlockSpec(shape, lambda i: (0, 0))

    flops = 2 * b_pad * (in_size * h1_size + h1_size * h2_size + h2_size * out_size)
    bytes_accessed = (
        xp.size * 4
        + (w1.size + w2.size + w3.size + b1.size + b2.size + b3.size) * 4
        + b_pad * out_size * 4
    )

    out = pl.pallas_call(
        _mlp_kernel,
        out_shape=jax.ShapeDtypeStruct((b_pad, out_size), jnp.float32),
        grid=grid,
        in_specs=[
            pl.BlockSpec((tile_b, in_size), lambda i: (i, 0)),  # x: tiled over batch
            resident(w1.shape), resident(b1.shape),
            resident(w2.shape), resident(b2.shape),
            resident(w3.shape), resident(b3.shape),
        ],
        out_specs=pl.BlockSpec((tile_b, out_size), lambda i: (i, 0)),
        compiler_params=pltpu.CompilerParams(
            dimension_semantics=("parallel",)),  # batch tiles shard across v7x's 2 TCs
        cost_estimate=pl.CostEstimate(
            flops=flops, transcendentals=0, bytes_accessed=bytes_accessed),
    )(xp, w1, b1, w2, b2, w3, b3)

    return out if b_pad == batch else out[:batch]


if __name__ == "__main__":
    # Small shapes consistent with the module (snake-game Q net).
    batch = 8
    input_size = 11
    hidden_size1 = 32
    hidden_size2 = 32
    output_size = 3

    key = jax.random.PRNGKey(0)
    kx, kp = jax.random.split(key)

    x = jax.random.normal(kx, (batch, input_size), jnp.float32)
    params = init_params(kp, input_size, hidden_size1, hidden_size2, output_size)
    w1, b1, w2, b2, w3, b3 = params

    out = linear_qnet_forward(x, params)
    jax.block_until_ready(out)
    assert out.shape == (batch, output_size)

    # Pure-JAX f32 reference (tolerance covers MXU f32-pass precision choices).
    ref = jnp.maximum(jnp.dot(x, w1) + b1, 0.0)
    ref = jnp.maximum(jnp.dot(ref, w2) + b2, 0.0)
    ref = jnp.dot(ref, w3) + b3

    assert jnp.allclose(out, ref, atol=2e-2, rtol=2e-2), (out, ref)

    # TODO(synk): save()/load() (torch.save / torch.load of the state dict) is
    # host-side file I/O with no Pallas equivalent; omitted.

    print("KERNEL_OK")
</pallas_src>

<mosaic_0001>
module attributes {stable_mosaic.version = 11 : i64} {
  func.func @_mlp_kernel(%arg0: i32, %arg1: memref<16x11xf32, #tpu.memory_space<vmem>>, %arg2: memref<11x32xf32, #tpu.memory_space<vmem>>, %arg3: memref<1x32xf32, #tpu.memory_space<vmem>>, %arg4: memref<32x32xf32, #tpu.memory_space<vmem>>, %arg5: memref<1x32xf32, #tpu.memory_space<vmem>>, %arg6: memref<32x3xf32, #tpu.memory_space<vmem>>, %arg7: memref<1x3xf32, #tpu.memory_space<vmem>>, %arg8: memref<16x3xf32, #tpu.memory_space<vmem>>) attributes {dimension_semantics = [#tpu.dimension_semantics<parallel>], iteration_bounds = array<i64: 1>, scalar_prefetch = 0 : i64, scratch_operands = 0 : i64, tpu.core_type = #tpu.core_type<tc>, window_params = [{transform_indices = @transform_0, window_bounds = array<i64: 16, 11>}, {pipeline_mode = #tpu.pipeline_mode<synchronous>, transform_indices = @transform_1, window_bounds = array<i64: 11, 32>}, {pipeline_mode = #tpu.pipeline_mode<synchronous>, transform_indices = @transform_2, window_bounds = array<i64: 1, 32>}, {pipeline_mode = #tpu.pipeline_mode<synchronous>, transform_indices = @transform_3, window_bounds = array<i64: 32, 32>}, {pipeline_mode = #tpu.pipeline_mode<synchronous>, transform_indices = @transform_4, window_bounds = array<i64: 1, 32>}, {pipeline_mode = #tpu.pipeline_mode<synchronous>, transform_indices = @transform_5, window_bounds = array<i64: 32, 3>}, {pipeline_mode = #tpu.pipeline_mode<synchronous>, transform_indices = @transform_6, window_bounds = array<i64: 1, 3>}, {transform_indices = @transform_7, window_bounds = array<i64: 16, 3>}]} {
    %c0 = arith.constant 0 : index
    %c0_0 = arith.constant 0 : index
    %0 = vector.load %arg1[%c0, %c0_0] : memref<16x11xf32, #tpu.memory_space<vmem>>, vector<16x11xf32>
    %c0_1 = arith.constant 0 : index
    %c0_2 = arith.constant 0 : index
    %1 = vector.load %arg2[%c0_1, %c0_2] : memref<11x32xf32, #tpu.memory_space<vmem>>, vector<11x32xf32>
    %cst = arith.constant dense<0.000000e+00> : vector<16x32xf32>
    %2 = tpu.matmul %0, %1, %cst {dimension_numbers = #tpu.dot_dimension_numbers<[1], [0], [0], [1], [0, 0, 1, 1], [], []>} : vector<16x11xf32>, vector<11x32xf32>, vector<16x32xf32> -> vector<16x32xf32>
    %c0_3 = arith.constant 0 : index
    %c0_4 = arith.constant 0 : index
    %3 = vector.load %arg3[%c0_3, %c0_4] : memref<1x32xf32, #tpu.memory_space<vmem>>, vector<1x32xf32>
    %4 = vector.broadcast %3 : vector<1x32xf32> to vector<16x32xf32>
    %5 = arith.addf %2, %4 : vector<16x32xf32>
    %cst_5 = arith.constant 0.000000e+00 : f32
    %6 = vector.broadcast %cst_5 : f32 to vector<16x32xf32>
    %7 = arith.maximumf %5, %6 : vector<16x32xf32>
    %c0_6 = arith.constant 0 : index
    %c0_7 = arith.constant 0 : index
    %8 = vector.load %arg4[%c0_6, %c0_7] : memref<32x32xf32, #tpu.memory_space<vmem>>, vector<32x32xf32>
    %cst_8 = arith.constant dense<0.000000e+00> : vector<16x32xf32>
    %9 = tpu.matmul %7, %8, %cst_8 {dimension_numbers = #tpu.dot_dimension_numbers<[1], [0], [0], [1], [0, 0, 1, 1], [], []>} : vector<16x32xf32>, vector<32x32xf32>, vector<16x32xf32> -> vector<16x32xf32>
    %c0_9 = arith.constant 0 : index
    %c0_10 = arith.constant 0 : index
    %10 = vector.load %arg5[%c0_9, %c0_10] : memref<1x32xf32, #tpu.memory_space<vmem>>, vector<1x32xf32>
    %11 = vector.broadcast %10 : vector<1x32xf32> to vector<16x32xf32>
    %12 = arith.addf %9, %11 : vector<16x32xf32>
    %cst_11 = arith.constant 0.000000e+00 : f32
    %13 = vector.broadcast %cst_11 : f32 to vector<16x32xf32>
    %14 = arith.maximumf %12, %13 : vector<16x32xf32>
    %c0_12 = arith.constant 0 : index
    %c0_13 = arith.constant 0 : index
    %15 = vector.load %arg6[%c0_12, %c0_13] : memref<32x3xf32, #tpu.memory_space<vmem>>, vector<32x3xf32>
    %cst_14 = arith.constant dense<0.000000e+00> : vector<16x3xf32>
    %16 = tpu.matmul %14, %15, %cst_14 {dimension_numbers = #tpu.dot_dimension_numbers<[1], [0], [0], [1], [0, 0, 1, 1], [], []>} : vector<16x32xf32>, vector<32x3xf32>, vector<16x3xf32> -> vector<16x3xf32>
    %c0_15 = arith.constant 0 : index
    %c0_16 = arith.constant 0 : index
    %17 = vector.load %arg7[%c0_15, %c0_16] : memref<1x3xf32, #tpu.memory_space<vmem>>, vector<1x3xf32>
    %18 = vector.broadcast %17 : vector<1x3xf32> to vector<16x3xf32>
    %19 = arith.addf %16, %18 : vector<16x3xf32>
    %c0_17 = arith.constant 0 : index
    %c0_18 = arith.constant 0 : index
    %20 = vector.load %arg8[%c0_17, %c0_18] : memref<16x3xf32, #tpu.memory_space<vmem>>, vector<16x3xf32>
    tpu.vector_store %arg8[%c0_17, %c0_18], %19 {strides = array<i32>} : memref<16x3xf32, #tpu.memory_space<vmem>>, vector<16x3xf32>,
    return
  }
  func.func @transform_0(%arg0: i32) -> (i32, i32) {
    %c0_i32 = arith.constant 0 : i32
    %c0_i32_0 = arith.constant 0 : i32
    return %arg0, %c0_i32 : i32, i32
  }
  func.func @transform_1(%arg0: i32) -> (i32, i32) {
    %c0_i32 = arith.constant 0 : i32
    %c0_i32_0 = arith.constant 0 : i32
    %c0_i32_1 = arith.constant 0 : i32
    return %c0_i32, %c0_i32_0 : i32, i32
  }
  func.func @transform_2(%arg0: i32) -> (i32, i32) {
    %c0_i32 = arith.constant 0 : i32
    %c0_i32_0 = arith.constant 0 : i32
    %c0_i32_1 = arith.constant 0 : i32
    return %c0_i32, %c0_i32_0 : i32, i32
  }
  func.func @transform_3(%arg0: i32) -> (i32, i32) {
    %c0_i32 = arith.constant 0 : i32
    %c0_i32_0 = arith.constant 0 : i32
    %c0_i32_1 = arith.constant 0 : i32
    return %c0_i32, %c0_i32_0 : i32, i32
  }
  func.func @transform_4(%arg0: i32) -> (i32, i32) {
    %c0_i32 = arith.constant 0 : i32
    %c0_i32_0 = arith.constant 0 : i32
    %c0_i32_1 = arith.constant 0 : i32
    return %c0_i32, %c0_i32_0 : i32, i32
  }
  func.func @transform_5(%arg0: i32) -> (i32, i32) {
    %c0_i32 = arith.constant 0 : i32
    %c0_i32_0 = arith.constant 0 : i32
    %c0_i32_1 = arith.constant 0 : i32
    return %c0_i32, %c0_i32_0 : i32, i32
  }
  func.func @transform_6(%arg0: i32) -> (i32, i32) {
    %c0_i32 = arith.constant 0 : i32
    %c0_i32_0 = arith.constant 0 : i32
    %c0_i32_1 = arith.constant 0 : i32
    return %c0_i32, %c0_i32_0 : i32, i32
  }
  func.func @transform_7(%arg0: i32) -> (i32, i32) {
    %c0_i32 = arith.constant 0 : i32
    %c0_i32_0 = arith.constant 0 : i32
    return %arg0, %c0_i32 : i32, i32
  }
}

</mosaic_0001>

<bundles_post_ra>
// kernel: linear_qnet_forward.1
= control target key start
LH: loop header
LB: loop body
LE: loop exit
PB: predicated region body
PF: predicated region fallthrough
CT: control target
= control target key end

     0   :  { %vm44_vm0 = vcmask 1042432   ;;  %vm37_vm1 = vcmask 89088   ;;  %vm397_vm2 = vmmov 1   ;;  %vm136_vm4 = vcmask 261120   ;;  %s495_s1 = inlined_call_operand.vmem [shape: f32[11,32], index: 1, kind: input, shape index: {}]   ;;  %s496_s0 = inlined_call_operand.vmem [shape: f32[16,11], index: 0, kind: input, shape index: {}]   ;;  %s497_s3 = inlined_call_operand.vmem [shape: f32[32,32], index: 3, kind: input, shape index: {}]   ;;  %s498_s5 = inlined_call_operand.vmem [shape: f32[32,3], index: 5, kind: input, shape index: {}]   ;;  %s499_s2 = inlined_call_operand.vmem [shape: f32[1,32], index: 2, kind: input, shape index: {}]   ;;  %s500_s4 = inlined_call_operand.vmem [shape: f32[1,32], index: 4, kind: input, shape index: {}]   ;;  %s501_s6 = inlined_call_operand.vmem [shape: f32[1,3], index: 6, kind: input, shape index: {}]   ;;  %s502_s7 = inlined_call_operand.vmem [shape: f32[16,3], index: 7, kind: output, shape index: {}]  }
   0x1   :  { %v28_v0 = vld [vmem:[%s495_s1] sm:$0xff]  ;;  %v29_v1 = vld [vmem:[%s495_s1 + $0x8] sm:$0x7]  ;;  %vm375_vm3 = vmpackc.low %vm44_vm0, %vm397_vm2  ;;  %vm312_vm5 = vcmask 23552  }
   0x2   :  { %v374_v2 = vpack.c.bf16 %v29_v1, %v28_v0  ;;  %v26_v3 = vld [vmem:[%s496_s0] sm:$0xff]  ;;  %v126_v5 = vld [vmem:[%s497_s3 + $0x8] sm:$0xff]  ;;  %v127_v8 = vld [vmem:[%s497_s3 + $0x10] sm:$0xff] }
   0x3   :  { %v125_v4 = vld [vmem:[%s497_s3] sm:$0xff]  ;;  %349 = vmatprep.mubr.msk.f32.mxu0 %vm37_vm1, %v26_v3  ;;  %v27_v7 = vld [vmem:[%s496_s0 + $0x8] sm:$0xff]  ;;  %v128_v9 = vld [vmem:[%s497_s3 + $0x18] sm:$0xff] }
   0x4   :  { %376 = vmatprep.subr.msk.bf16.mxu0 %vm375_vm3, %v374_v2  ;;  %v380_v6 = vpack.c.bf16 %v126_v5, %v125_v4  ;;  %v384_v10 = vpack.c.bf16 %v128_v9, %v127_v8  ;;  %v220_v11 = vld [vmem:[%s498_s5] sm:$0xff]  ;;  %v221_v12 = vld [vmem:[%s498_s5 + $0x8] sm:$0xff]  ;;  %v222_v21 = vld [vmem:[%s498_s5 + $0x10] sm:$0xff] }
   0x5   :  { %379 = vmatpush3.bf16.msk.msra.mxu0 %vm375_vm3, %v374_v2  ;;  %v388_v13 = vpack.c.bf16 %v221_v12, %v220_v11  ;;  %v319_v14 = vld [vmem:[%s499_s2] ss:$0 sm:$0xff]  ;;  %v223_v22 = vld [vmem:[%s498_s5 + $0x18] sm:$0xff] }
   0x6   :  { %381 = vmatprep.subr.bf16.mxu1 %v380_v6  ;;  %v392_v23 = vpack.c.bf16 %v223_v22, %v222_v21  ;;  %v323_v24 = vld [vmem:[%s500_s4] ss:$0 sm:$0xff] }
   0x7   :  { %383 = vmatpush3.bf16.msra.mxu1 %v380_v6  ;;  %389 = vmatprep.subr.bf16.mxu0 %v388_v13  ;;  %v326_v31 = vld [vmem:[%s501_s6] ss:$0 sm:$0xff] }
   0x8   :  { %350 = vmatmul.mubr.msk.f32.vlgmr.msra.gmra.mrb[0].mxu0 %vm37_vm1, %v27_v7  ;;  %385 = vmatprep.subr.bf16.mxu1 %v384_v10 }
   0x9   :  { %391 = vmatpush3.bf16.msra.mxu0 %v388_v13 }
   0xa   :  { %393 = vmatprep.subr.bf16.mxu0 %v392_v23 }
   0xb   :  { %387 = vmatpush3.bf16.msra.mxu1 %v384_v10 }
   0xd   :  { %395 = vmatpush3.bf16.msra.mxu0 %v392_v23 }
  0xdb   :  { %v351_v15 = vpop.f32.mrb[0].mxu0 }
  0xdc   :  { %v120_v16 = vadd.f32 %v351_v15, %v319_v14  ;;  %v114_v17 = vpop.f32.mrb[1].mxu0 }
  0xdd   :  { %v115_v18 = vadd.f32 %v319_v14, %v114_v17 }
  0xde   :  { %v124_v20 = vmax.f32 %v120_v16, 0.0 }
  0xdf   :  { %v123_v19 = vmax.f32 %v115_v18, 0.0 }
  0xe1   :  { %360 = vmatprep.mubr.msk.f32.mxu1 %vm136_vm4, %v123_v19 }
  0xe2   :  { %361 = vmatmul.mubr.msk.f32.vlgmr.msra.gmra.mrb[0].mxu1 %vm136_vm4, %v124_v20 }
 0x1b5   :  { %v362_v25 = vpop.f32.mrb[0].mxu1 }
 0x1b6   :  { %v215_v26 = vadd.f32 %v362_v25, %v323_v24  ;;  %v209_v27 = vpop.f32.mrb[1].mxu1 }
 0x1b7   :  { %v210_v28 = vadd.f32 %v323_v24, %v209_v27 }
 0x1b8   :  { %v219_v30 = vmax.f32 %v215_v26, 0.0 }
 0x1b9   :  { %v218_v29 = vmax.f32 %v210_v28, 0.0 }
 0x1bb   :  { %371 = vmatprep.mubr.msk.f32.mxu0 %vm136_vm4, %v218_v29 }
 0x1bc   :  { %372 = vmatmul.mubr.msk.f32.vlgmr.msra.gmra.mrb[2].mxu0 %vm136_vm4, %v219_v30 }
 0x28f   :  { %v373_v32 = vpop.f32.mrb[2].mxu0 }
 0x290   :  { %v309_v33 = vadd.f32 %v373_v32, %v326_v31  ;;  %v303_v34 = vpop.f32.mrb[3].mxu0 }
 0x291   :  { %v304_v35 = vadd.f32 %v326_v31, %v303_v34 }
 0x292   :  { %314 = vst.msk [vmem:[%s502_s7 + $0x8] sm:$0xff] %vm312_vm5, %v309_v33 }
 0x293   :  { %313 = vst.msk [vmem:[%s502_s7] sm:$0xff] %vm312_vm5, %v304_v35 }

</bundles_post_ra>
